<compile_context>
chip_gen: v6e
topology: v6e:2x2x1
jax: 0.10.0
libtpu: 0.0.40
codegen_flags: <defaults>
</compile_context>

<pallas_src>
import functools

import numpy as np
import jax
import jax.numpy as jnp
from jax.experimental import pallas as pl
from jax.experimental.pallas import tpu as pltpu


def _expand_conv_weight(w_hwio, in_w, out_w, stride, cin_pad, cout_pad):
    """Block-Toeplitz expansion of a conv weight.

    Returns big[KH, in_w*cin_pad, out_w*cout_pad] with
      big[i, (stride*ow + j)*cin_pad + ci, ow*cout_pad + co] = w[i, j, ci, co]
    so that, for kernel-row tap i, a GEMM of one activation row-slab (columns
    laid out as (width_position, channel)) against big[i] produces all `out_w`
    output positions of one output row at once.
    """
    KH, KW, Cin, Cout = w_hwio.shape
    i_, j_, ow_, ci_, co_ = np.meshgrid(
        np.arange(KH), np.arange(KW), np.arange(out_w),
        np.arange(Cin), np.arange(Cout), indexing="ij")
    rows = (stride * ow_ + j_) * cin_pad + ci_
    cols = ow_ * cout_pad + co_
    big = jnp.zeros((KH, in_w * cin_pad, out_w * cout_pad), w_hwio.dtype)
    return big.at[i_.ravel(), rows.ravel(), cols.ravel()].set(
        w_hwio[i_.ravel(), j_.ravel(), ci_.ravel(), co_.ravel()])


def fused_two_conv_kernel(p_ref, w1_ref, b1_ref, w2_ref, b2_ref, o_ref, act_ref,
                          *, slope1, slope2):
    """Both conv stages (+ bias + leaky-relu) for one image, fully in VMEM."""
    oh1 = p_ref.shape[0]                       # 8 conv1 output rows

    # ---- conv1 + leaky(slope1): one (OH1, K1pad) @ (K1pad, 128) GEMM ----
    y1 = jnp.dot(p_ref[...], w1_ref[...], preferred_element_type=jnp.float32)
    y1 = y1 + b1_ref[...]
    act = jnp.where(y1 > 0.0, y1, y1 * slope1)

    # Keep the activation resident in VMEM; zero the tail rows so the shifted
    # row-slab reads below are in-bounds and deterministic.
    act_ref[pl.ds(0, oh1), :] = act
    act_ref[pl.ds(oh1, act_ref.shape[0] - oh1), :] = jnp.zeros(
        (act_ref.shape[0] - oh1, act_ref.shape[1]), jnp.float32)

    # ---- conv2 + leaky(slope2): 3 tap-row GEMMs, each (OH1,128)@(128,128) ----
    y2 = jnp.dot(act_ref[pl.ds(0, oh1), :], w2_ref[0],
                 preferred_element_type=jnp.float32)
    for i in range(1, w2_ref.shape[0]):
        y2 = y2 + jnp.dot(act_ref[pl.ds(i, oh1), :], w2_ref[i],
                          preferred_element_type=jnp.float32)
    y2 = y2 + b2_ref[...]
    o_ref[...] = jnp.where(y2 > 0.0, y2, y2 * slope2)


@jax.jit
def model_forward(x_nchw, w1, b1, w2, b2):
    N, Cin, H, W = x_nchw.shape
    KH, KW, _, C1 = w1.shape
    C2 = w2.shape[3]
    S1, P1 = 2, 1
    OH1 = (H + 2 * P1 - KH) // S1 + 1                 # 8
    OW1 = (W + 2 * P1 - KW) // S1 + 1                 # 8
    OH2, OW2 = OH1 - (KH - 1), OW1 - (KW - 1)         # 6, 6

    C1PAD = max(C1, 128 // OW1)                       # 16 -> act row = 128 lanes
    ACT_W = OW1 * C1PAD                               # 128
    OUT_W = ((OW2 * C2 + 127) // 128) * 128           # 128
    WP = W + 2 * P1                                   # 18 (padded input width)
    K1 = KH * WP * Cin                                # 216
    K1PAD = ((K1 + 127) // 128) * 128                 # 256

    # --- host glue: NHWC transpose + conv1 row-slab patches (pads/slices only)
    x = jnp.transpose(x_nchw, (0, 2, 3, 1))
    xp = jnp.pad(x, ((0, 0), (P1, P1), (P1, P1), (0, 0)))
    slabs = [xp[:, i:i + S1 * (OH1 - 1) + 1:S1, :, :].reshape(N, OH1, WP * Cin)
             for i in range(KH)]
    patches = jnp.pad(jnp.concatenate(slabs, axis=-1),
                      ((0, 0), (0, 0), (0, K1PAD - K1)))        # (N, OH1, K1PAD)

    # --- tiny one-time weight / bias expansions ---
    w1big = _expand_conv_weight(w1, WP, OW1, S1, Cin, C1PAD)    # (KH, 72, 128)
    w1big = jnp.pad(w1big.reshape(K1, ACT_W), ((0, K1PAD - K1), (0, 0)))
    b1big = jnp.pad(jnp.broadcast_to(b1, (OW1, C1)),
                    ((0, 0), (0, C1PAD - C1))).reshape(1, ACT_W)

    w2big = _expand_conv_weight(w2, OW1, OW2, 1, C1PAD, C2)     # (KH, 128, 48)
    w2big = jnp.pad(w2big, ((0, 0), (0, 0), (0, OUT_W - OW2 * C2)))
    b2big = jnp.pad(jnp.broadcast_to(b2, (OW2, C2)).reshape(1, OW2 * C2),
                    ((0, 0), (0, OUT_W - OW2 * C2)))

    out = pl.pallas_call(
        functools.partial(fused_two_conv_kernel, slope1=0.2, slope2=0.1),
        out_shape=jax.ShapeDtypeStruct((N, OH1, OUT_W), jnp.float32),
        grid=(N,),                                   # one step per image
        in_specs=[
            pl.BlockSpec((None, OH1, K1PAD), lambda n: (n, 0, 0)),
            pl.BlockSpec((K1PAD, ACT_W), lambda n: (0, 0)),
            pl.BlockSpec((1, ACT_W), lambda n: (0, 0)),
            pl.BlockSpec((KH, ACT_W, OUT_W), lambda n: (0, 0, 0)),
            pl.BlockSpec((1, OUT_W), lambda n: (0, 0)),
        ],
        out_specs=pl.BlockSpec((None, OH1, OUT_W), lambda n: (n, 0, 0)),
        scratch_shapes=[pltpu.VMEM((2 * OH1, ACT_W), jnp.float32)],
        compiler_params=pltpu.CompilerParams(
            dimension_semantics=("parallel",)),      # 2 images -> both v7x TCs
    )(patches, w1big, b1big, w2big, b2big)

    # Valid region: rows < OH2, cols < OW2*C2; then NHWC -> NCHW.
    y = out[:, :OH2, :OW2 * C2].reshape(N, OH2, OW2, C2)
    return jnp.transpose(y, (0, 3, 1, 2))


def _reference(x_nchw, w1, b1, w2, b2):
    """Pure-JAX reference (lax conv) for a correctness sanity check."""
    def conv(x, w, b, stride, pad):
        y = jax.lax.conv_general_dilated(
            x, jnp.transpose(w, (3, 2, 0, 1)),          # HWIO -> OIHW
            window_strides=(stride, stride),
            padding=((pad, pad), (pad, pad)),
            dimension_numbers=("NCHW", "OIHW", "NCHW"))
        return y + b[None, :, None, None]

    v1 = conv(x_nchw, w1, b1, 2, 1)
    v4 = jnp.where(v1 > 0, v1, v1 * 0.2)
    v5 = conv(v4, w2, b2, 1, 0)
    return jnp.where(v5 > 0, v5, v5 * 0.1)


if __name__ == "__main__":
    key = jax.random.PRNGKey(0)
    k1, k2, k3, k4, kx = jax.random.split(key, 5)

    # conv1: Conv2d(4, 4, 3, stride=2, padding=1) -> HWIO weight (3,3,4,4)
    w1 = jax.random.normal(k1, (3, 3, 4, 4), jnp.float32) * 0.1
    b1 = jax.random.normal(k2, (4,), jnp.float32) * 0.1

    # TODO(synk): module declares Conv2d(8, 8, 3) but conv1 only produces 4
    # channels (the PyTorch forward would raise); conv2 in_channels adapted to 4
    # (out_channels=8, k=3, stride=1, padding=0) so the pipeline is runnable.
    w2 = jax.random.normal(k3, (3, 3, 4, 8), jnp.float32) * 0.1
    b2 = jax.random.normal(k4, (8,), jnp.float32) * 0.1

    x = jax.random.normal(kx, (2, 4, 16, 16), jnp.float32)      # NCHW input

    out = model_forward(x, w1, b1, w2, b2)
    jax.block_until_ready(out)

    ref = _reference(x, w1, b1, w2, b2)
    assert out.shape == (2, 8, 6, 6), out.shape
    assert jnp.allclose(out, ref, atol=1e-4, rtol=1e-4), "mismatch vs reference"

    print("KERNEL_OK")
</pallas_src>

<mosaic_0001>
module attributes {stable_mosaic.version = 11 : i64} {
  func.func @fused_two_conv_kernel(%arg0: i32, %arg1: memref<1x8x256xf32, #tpu.memory_space<vmem>>, %arg2: memref<256x128xf32, #tpu.memory_space<vmem>>, %arg3: memref<1x128xf32, #tpu.memory_space<vmem>>, %arg4: memref<3x128x128xf32, #tpu.memory_space<vmem>>, %arg5: memref<1x128xf32, #tpu.memory_space<vmem>>, %arg6: memref<1x8x128xf32, #tpu.memory_space<vmem>>, %arg7: memref<16x128xf32, #tpu.memory_space<vmem>>) attributes {dimension_semantics = [#tpu.dimension_semantics<parallel>], iteration_bounds = array<i64: 2>, scalar_prefetch = 0 : i64, scratch_operands = 1 : i64, tpu.core_type = #tpu.core_type<tc>, window_params = [{transform_indices = @transform_0, window_bounds = array<i64: 1, 8, 256>}, {pipeline_mode = #tpu.pipeline_mode<synchronous>, transform_indices = @transform_1, window_bounds = array<i64: 256, 128>}, {pipeline_mode = #tpu.pipeline_mode<synchronous>, transform_indices = @transform_2, window_bounds = array<i64: 1, 128>}, {pipeline_mode = #tpu.pipeline_mode<synchronous>, transform_indices = @transform_3, window_bounds = array<i64: 3, 128, 128>}, {pipeline_mode = #tpu.pipeline_mode<synchronous>, transform_indices = @transform_4, window_bounds = array<i64: 1, 128>}, {transform_indices = @transform_5, window_bounds = array<i64: 1, 8, 128>}]} {
    %c0 = arith.constant 0 : index
    %c0_0 = arith.constant 0 : index
    %c0_1 = arith.constant 0 : index
    %0 = vector.load %arg1[%c0, %c0_0, %c0_1] : memref<1x8x256xf32, #tpu.memory_space<vmem>>, vector<1x8x256xf32>
    %1 = vector.shape_cast %0 : vector<1x8x256xf32> to vector<8x256xf32>
    %c0_2 = arith.constant 0 : index
    %c0_3 = arith.constant 0 : index
    %2 = vector.load %arg2[%c0_2, %c0_3] : memref<256x128xf32, #tpu.memory_space<vmem>>, vector<256x128xf32>
    %cst = arith.constant dense<0.000000e+00> : vector<8x128xf32>
    %3 = tpu.matmul %1, %2, %cst {dimension_numbers = #tpu.dot_dimension_numbers<[1], [0], [0], [1], [0, 0, 1, 1], [], []>} : vector<8x256xf32>, vector<256x128xf32>, vector<8x128xf32> -> vector<8x128xf32>
    %c0_4 = arith.constant 0 : index
    %c0_5 = arith.constant 0 : index
    %4 = vector.load %arg3[%c0_4, %c0_5] : memref<1x128xf32, #tpu.memory_space<vmem>>, vector<1x128xf32>
    %5 = vector.broadcast %4 : vector<1x128xf32> to vector<8x128xf32>
    %6 = arith.addf %3, %5 : vector<8x128xf32>
    %cst_6 = arith.constant 0.000000e+00 : f32
    %7 = vector.broadcast %cst_6 : f32 to vector<8x128xf32>
    %8 = arith.cmpf ogt, %6, %7 : vector<8x128xf32>
    %cst_7 = arith.constant 2.000000e-01 : f32
    %9 = vector.broadcast %cst_7 : f32 to vector<8x128xf32>
    %10 = arith.mulf %6, %9 : vector<8x128xf32>
    %11 = arith.select %8, %6, %10 : vector<8x128xi1>, vector<8x128xf32>
    %c0_8 = arith.constant 0 : index
    %c0_9 = arith.constant 0 : index
    %12 = vector.load %arg7[%c0_8, %c0_9] : memref<16x128xf32, #tpu.memory_space<vmem>>, vector<8x128xf32>
    tpu.vector_store %arg7[%c0_8, %c0_9], %11 {strides = array<i32>} : memref<16x128xf32, #tpu.memory_space<vmem>>, vector<8x128xf32>,
    %cst_10 = arith.constant 0.000000e+00 : f32
    %13 = vector.broadcast %cst_10 : f32 to vector<8x128xf32>
    %c8 = arith.constant 8 : index
    %c0_11 = arith.constant 0 : index
    %14 = vector.load %arg7[%c8, %c0_11] : memref<16x128xf32, #tpu.memory_space<vmem>>, vector<8x128xf32>
    tpu.vector_store %arg7[%c8, %c0_11], %13 {strides = array<i32>} : memref<16x128xf32, #tpu.memory_space<vmem>>, vector<8x128xf32>,
    %c0_12 = arith.constant 0 : index
    %c0_13 = arith.constant 0 : index
    %15 = vector.load %arg7[%c0_12, %c0_13] : memref<16x128xf32, #tpu.memory_space<vmem>>, vector<8x128xf32>
    %c0_14 = arith.constant 0 : index
    %c0_15 = arith.constant 0 : index
    %c0_16 = arith.constant 0 : index
    %16 = vector.load %arg4[%c0_14, %c0_15, %c0_16] : memref<3x128x128xf32, #tpu.memory_space<vmem>>, vector<1x128x128xf32>
    %17 = vector.shape_cast %16 : vector<1x128x128xf32> to vector<128x128xf32>
    %cst_17 = arith.constant dense<0.000000e+00> : vector<8x128xf32>
    %18 = tpu.matmul %15, %17, %cst_17 {dimension_numbers = #tpu.dot_dimension_numbers<[1], [0], [0], [1], [0, 0, 1, 1], [], []>} : vector<8x128xf32>, vector<128x128xf32>, vector<8x128xf32> -> vector<8x128xf32>
    %c1 = arith.constant 1 : index
    %c0_18 = arith.constant 0 : index
    %19 = vector.load %arg7[%c1, %c0_18] : memref<16x128xf32, #tpu.memory_space<vmem>>, vector<8x128xf32>
    %c1_19 = arith.constant 1 : index
    %c0_20 = arith.constant 0 : index
    %c0_21 = arith.constant 0 : index
    %20 = vector.load %arg4[%c1_19, %c0_20, %c0_21] : memref<3x128x128xf32, #tpu.memory_space<vmem>>, vector<1x128x128xf32>
    %21 = vector.shape_cast %20 : vector<1x128x128xf32> to vector<128x128xf32>
    %cst_22 = arith.constant dense<0.000000e+00> : vector<8x128xf32>
    %22 = tpu.matmul %19, %21, %cst_22 {dimension_numbers = #tpu.dot_dimension_numbers<[1], [0], [0], [1], [0, 0, 1, 1], [], []>} : vector<8x128xf32>, vector<128x128xf32>, vector<8x128xf32> -> vector<8x128xf32>
    %23 = arith.addf %18, %22 : vector<8x128xf32>
    %c2 = arith.constant 2 : index
    %c0_23 = arith.constant 0 : index
    %24 = vector.load %arg7[%c2, %c0_23] : memref<16x128xf32, #tpu.memory_space<vmem>>, vector<8x128xf32>
    %c2_24 = arith.constant 2 : index
    %c0_25 = arith.constant 0 : index
    %c0_26 = arith.constant 0 : index
    %25 = vector.load %arg4[%c2_24, %c0_25, %c0_26] : memref<3x128x128xf32, #tpu.memory_space<vmem>>, vector<1x128x128xf32>
    %26 = vector.shape_cast %25 : vector<1x128x128xf32> to vector<128x128xf32>
    %cst_27 = arith.constant dense<0.000000e+00> : vector<8x128xf32>
    %27 = tpu.matmul %24, %26, %cst_27 {dimension_numbers = #tpu.dot_dimension_numbers<[1], [0], [0], [1], [0, 0, 1, 1], [], []>} : vector<8x128xf32>, vector<128x128xf32>, vector<8x128xf32> -> vector<8x128xf32>
    %28 = arith.addf %23, %27 : vector<8x128xf32>
    %c0_28 = arith.constant 0 : index
    %c0_29 = arith.constant 0 : index
    %29 = vector.load %arg5[%c0_28, %c0_29] : memref<1x128xf32, #tpu.memory_space<vmem>>, vector<1x128xf32>
    %30 = vector.broadcast %29 : vector<1x128xf32> to vector<8x128xf32>
    %31 = arith.addf %28, %30 : vector<8x128xf32>
    %cst_30 = arith.constant 0.000000e+00 : f32
    %32 = vector.broadcast %cst_30 : f32 to vector<8x128xf32>
    %33 = arith.cmpf ogt, %31, %32 : vector<8x128xf32>
    %cst_31 = arith.constant 1.000000e-01 : f32
    %34 = vector.broadcast %cst_31 : f32 to vector<8x128xf32>
    %35 = arith.mulf %31, %34 : vector<8x128xf32>
    %36 = arith.select %33, %31, %35 : vector<8x128xi1>, vector<8x128xf32>
    %c0_32 = arith.constant 0 : index
    %c0_33 = arith.constant 0 : index
    %c0_34 = arith.constant 0 : index
    %37 = vector.load %arg6[%c0_32, %c0_33, %c0_34] : memref<1x8x128xf32, #tpu.memory_space<vmem>>, vector<1x8x128xf32>
    %38 = vector.shape_cast %37 : vector<1x8x128xf32> to vector<8x128xf32>
    %39 = vector.shape_cast %36 : vector<8x128xf32> to vector<1x8x128xf32>
    tpu.vector_store %arg6[%c0_32, %c0_33, %c0_34], %39 {strides = array<i32>} : memref<1x8x128xf32, #tpu.memory_space<vmem>>, vector<1x8x128xf32>,
    return
  }
  func.func @transform_0(%arg0: i32) -> (i32, i32, i32) {
    %c0_i32 = arith.constant 0 : i32
    %c0_i32_0 = arith.constant 0 : i32
    %c0_i32_1 = arith.constant 0 : i32
    return %arg0, %c0_i32, %c0_i32_0 : i32, i32, i32
  }
  func.func @transform_1(%arg0: i32) -> (i32, i32) {
    %c0_i32 = arith.constant 0 : i32
    %c0_i32_0 = arith.constant 0 : i32
    %c0_i32_1 = arith.constant 0 : i32
    return %c0_i32, %c0_i32_0 : i32, i32
  }
  func.func @transform_2(%arg0: i32) -> (i32, i32) {
    %c0_i32 = arith.constant 0 : i32
    %c0_i32_0 = arith.constant 0 : i32
    %c0_i32_1 = arith.constant 0 : i32
    return %c0_i32, %c0_i32_0 : i32, i32
  }
  func.func @transform_3(%arg0: i32) -> (i32, i32, i32) {
    %c0_i32 = arith.constant 0 : i32
    %c0_i32_0 = arith.constant 0 : i32
    %c0_i32_1 = arith.constant 0 : i32
    %c0_i32_2 = arith.constant 0 : i32
    return %c0_i32, %c0_i32_0, %c0_i32_1 : i32, i32, i32
  }
  func.func @transform_4(%arg0: i32) -> (i32, i32) {
    %c0_i32 = arith.constant 0 : i32
    %c0_i32_0 = arith.constant 0 : i32
    %c0_i32_1 = arith.constant 0 : i32
    return %c0_i32, %c0_i32_0 : i32, i32
  }
  func.func @transform_5(%arg0: i32) -> (i32, i32, i32) {
    %c0_i32 = arith.constant 0 : i32
    %c0_i32_0 = arith.constant 0 : i32
    %c0_i32_1 = arith.constant 0 : i32
    return %arg0, %c0_i32, %c0_i32_0 : i32, i32, i32
  }
}

</mosaic_0001>

<bundles_post_ra>
// kernel: model_forward.1
= control target key start
LH: loop header
LB: loop body
LE: loop exit
PB: predicated region body
PF: predicated region fallthrough
CT: control target
= control target key end

     0   :  { %s954_s18 = smov 0   ;;  %s1280_s0 = inlined_call_operand.vmem [shape: f32[2,8,256], index: 0, kind: input, shape index: {}]   ;;  %s1281_s1 = inlined_call_operand.vmem [shape: f32[256,128], index: 1, kind: input, shape index: {}]   ;;  %s1282_s2 = inlined_call_operand.vmem [shape: f32[1,128], index: 2, kind: input, shape index: {}]   ;;  %s1283_s3 = inlined_call_operand.vmem [shape: f32[3,128,128], index: 3, kind: input, shape index: {}]   ;;  %s1284_s4 = inlined_call_operand.vmem [shape: f32[1,128], index: 4, kind: input, shape index: {}]   ;;  %s1285_s5 = inlined_call_operand.vmem [shape: f32[2,8,128], index: 5, kind: output, shape index: {}]  }
   0x1 LB: > { %s668_s19 = sadd.s32 4294967295, %s920_s18   ;;  %p672_p0 = scmp.ge.s32.totalorder %s920_s18, 1  ;;  %s920_s18 = sphi %s954_s18, %s15_s18  }
   0x2   : > { %p187_p1 = scmp.lt.s32.totalorder %s920_s18, 3 }
   0x4   : > { %p188_p2 = pnand %p672_p0, %p187_p1 }
   0x5   : > { %p214_p3 = scmp.lt.s32.totalorder (!%p188_p2), %s668_s19, 1 }
   0x6   : > { %191 = sbr.rel (%p188_p2) target bundleno = 487 (0x1e7), region = 40 }
   0xb   : > { %v256_v0 = vld [vmem:[%s1281_s1 + $0xf8] sm:$0xff]  ;;  %v255_v2 = vld [vmem:[%s1281_s1 + $0xf0] sm:$0xff]  ;;  %v922_v4 = vmov 0.0   ;;  %v254_v5 = vld [vmem:[%s1281_s1 + $0xe8] sm:$0xff]  ;;  %s1287_s19 = smov (!%p214_p3, %s668_s19), 1  ;;  %vm923_vm0 = vmmov 0  }
   0xc   : > { %v240_v1 = vld [vmem:[%s1281_s1 + $0x78] sm:$0xff]  ;;  %713 = vmatprep.subr.mxu0 %v256_v0  ;;  %v239_v3 = vld [vmem:[%s1281_s1 + $0x70] sm:$0xff]  ;;  %799 = vmatprep.subr.mxu1 %v922_v4  ;;  %338 = vst [vmem:[#allocation2 + $0x8] sm:$0xff] %v922_v4  ;;  %v238_v6 = vld [vmem:[%s1281_s1 + $0x68] sm:$0xff]  ;;  %s712_s9 = sshll.u32 %s1287_s19, 4  ;;  %s675_s29 = sshll.u32 %s1287_s19, 3 }
   0xd   : > { %714 = vmatpush3.msra.mxu0 %v240_v1  ;;  %v253_v7 = vld [vmem:[%s1281_s1 + $0xe0] sm:$0xff]  ;;  %v252_v9 = vld [vmem:[%s1281_s1 + $0xd8] sm:$0xff]  ;;  %s1000_s20 = scalar_lea.vmem %s1280_s0, %s712_s9  ;;  %v251_v11 = vld [vmem:[%s1281_s1 + $0xd0] sm:$0xff]  ;;  %831 = vmatprep.mubr.msk.f32.mxu1 %vm923_vm0, %v922_v4  ;;  %s222_s7 = scalar_lea.vmem %s1285_s5, %s675_s29 }
   0xe   : > { %715 = vmatprep.subr.mxu0 %v255_v2  ;;  %v237_v8 = vld [vmem:[%s1281_s1 + $0x60] sm:$0xff]  ;;  %v236_v10 = vld [vmem:[%s1281_s1 + $0x58] sm:$0xff]  ;;  %v235_v12 = vld [vmem:[%s1281_s1 + $0x50] sm:$0xff] }
   0xf   : > { %716 = vmatpush3.msra.mxu0 %v239_v3  ;;  %v250_v13 = vld [vmem:[%s1281_s1 + $0xc8] sm:$0xff]  ;;  %v692_v16 = vld [vmem:[%s1283_s3 + $0xf8] sm:$0xff]  ;;  %v249_v17 = vld [vmem:[%s1281_s1 + $0xc0] sm:$0xff] }
  0x10   : > { %717 = vmatprep.subr.mxu0 %v254_v5  ;;  %v224_v14 = vld [vmem:[%s1000_s20 + $0x8] sm:$0xff]  ;;  %800 = vmatpush3.msra.mxu1 %v692_v16  ;;  %v691_v18 = vld [vmem:[%s1283_s3 + $0xf0] sm:$0xff]  ;;  %v233_v19 = vld [vmem:[%s1281_s1 + $0x40] sm:$0xff] }
  0x11   : > { %718 = vmatpush3.msra.mxu0 %v238_v6  ;;  %v234_v15 = vld [vmem:[%s1281_s1 + $0x48] sm:$0xff]  ;;  %328 = vmatprep.mubr.f32.mxu0 %v224_v14  ;;  %v248_v21 = vld [vmem:[%s1281_s1 + $0xb8] sm:$0xff]  ;;  %v689_v23 = vld [vmem:[%s1283_s3 + $0xe0] sm:$0xff] }
  0x12   : > { %719 = vmatprep.subr.mxu0 %v253_v7  ;;  %801 = vmatprep.subr.mxu1 %v922_v4  ;;  %v690_v20 = vld [vmem:[%s1283_s3 + $0xe8] sm:$0xff]  ;;  %v232_v22 = vld [vmem:[%s1281_s1 + $0x38] sm:$0xff]  ;;  %v247_v24 = vld [vmem:[%s1281_s1 + $0xb0] sm:$0xff] }
  0x13   : > { %720 = vmatpush3.msra.mxu0 %v237_v8  ;;  %802 = vmatpush3.msra.mxu1 %v691_v18  ;;  %v231_v25 = vld [vmem:[%s1281_s1 + $0x30] sm:$0xff]  ;;  %v688_v26 = vld [vmem:[%s1283_s3 + $0xd8] sm:$0xff]  ;;  %v246_v27 = vld [vmem:[%s1281_s1 + $0xa8] sm:$0xff] }
  0x14   : > { %721 = vmatprep.subr.mxu0 %v252_v9  ;;  %803 = vmatprep.subr.mxu1 %v922_v4  ;;  %v230_v28 = vld [vmem:[%s1281_s1 + $0x28] sm:$0xff]  ;;  %v687_v29 = vld [vmem:[%s1283_s3 + $0xd0] sm:$0xff]  ;;  %v245_v30 = vld [vmem:[%s1281_s1 + $0xa0] sm:$0xff] }
  0x15   : > { %722 = vmatpush3.msra.mxu0 %v236_v10  ;;  %804 = vmatpush3.msra.mxu1 %v690_v20  ;;  %v229_v31 = vld [vmem:[%s1281_s1 + $0x20] sm:$0xff]  ;;  %v686_v32 = vld [vmem:[%s1283_s3 + $0xc8] sm:$0xff]  ;;  %v244_v33 = vld [vmem:[%s1281_s1 + $0x98] sm:$0xff] }
  0x16   : > { %723 = vmatprep.subr.mxu0 %v251_v11  ;;  %805 = vmatprep.subr.mxu1 %v922_v4  ;;  %v228_v34 = vld [vmem:[%s1281_s1 + $0x18] sm:$0xff]  ;;  %v243_v35 = vld [vmem:[%s1281_s1 + $0x90] sm:$0xff]  ;;  %v242_v37 = vld [vmem:[%s1281_s1 + $0x88] sm:$0xff] }
  0x17   : > { %724 = vmatpush3.msra.mxu0 %v235_v12  ;;  %806 = vmatpush3.msra.mxu1 %v689_v23  ;;  %v227_v36 = vld [vmem:[%s1281_s1 + $0x10] sm:$0xff]  ;;  %v226_v38 = vld [vmem:[%s1281_s1 + $0x8] sm:$0xff]  ;;  %v241_v39 = vld [vmem:[%s1281_s1 + $0x80] sm:$0xff] }
  0x18   : > { %725 = vmatprep.subr.mxu0 %v250_v13  ;;  %807 = vmatprep.subr.mxu1 %v922_v4  ;;  %v225_v40 = vld [vmem:[%s1281_s1] sm:$0xff]  ;;  %v355_v42 = vld [vmem:[%s1283_s3 + $0x78] sm:$0xff]  ;;  %v354_v43 = vld [vmem:[%s1283_s3 + $0x70] sm:$0xff] }
  0x19   : > { %726 = vmatpush3.msra.mxu0 %v234_v15  ;;  %808 = vmatpush3.msra.mxu1 %v688_v26  ;;  %v223_v41 = vld [vmem:[%s1000_s20] sm:$0xff]  ;;  %v353_v44 = vld [vmem:[%s1283_s3 + $0x68] sm:$0xff]  ;;  %v351_v46 = vld [vmem:[%s1283_s3 + $0x58] sm:$0xff] }
  0x1a   : > { %727 = vmatprep.subr.mxu0 %v249_v17  ;;  %809 = vmatprep.subr.mxu1 %v922_v4  ;;  %v352_v45 = vld [vmem:[%s1283_s3 + $0x60] sm:$0xff]  ;;  %v350_v47 = vld [vmem:[%s1283_s3 + $0x50] sm:$0xff]  ;;  %v349_v48 = vld [vmem:[%s1283_s3 + $0x48] sm:$0xff] }
  0x1b   : > { %728 = vmatpush3.msra.mxu0 %v233_v19  ;;  %810 = vmatpush3.msra.mxu1 %v687_v29  ;;  %v348_v49 = vld [vmem:[%s1283_s3 + $0x40] sm:$0xff]  ;;  %v347_v50 = vld [vmem:[%s1283_s3 + $0x38] sm:$0xff]  ;;  %v346_v51 = vld [vmem:[%s1283_s3 + $0x30] sm:$0xff] }
  0x1c   : > { %729 = vmatprep.subr.mxu0 %v248_v21  ;;  %811 = vmatprep.subr.mxu1 %v922_v4  ;;  %v345_v52 = vld [vmem:[%s1283_s3 + $0x28] sm:$0xff]  ;;  %v685_v53 = vld [vmem:[%s1283_s3 + $0xc0] sm:$0xff]  ;;  %v684_v55 = vld [vmem:[%s1283_s3 + $0xb8] sm:$0xff] }
  0x1d   : > { %730 = vmatpush3.msra.mxu0 %v232_v22  ;;  %812 = vmatpush3.msra.mxu1 %v686_v32  ;;  %v344_v54 = vld [vmem:[%s1283_s3 + $0x20] sm:$0xff]  ;;  %v343_v56 = vld [vmem:[%s1283_s3 + $0x18] sm:$0xff]  ;;  %v683_v57 = vld [vmem:[%s1283_s3 + $0xb0] sm:$0xff] }
  0x1e   : > { %731 = vmatprep.subr.mxu0 %v247_v24  ;;  %813 = vmatprep.subr.mxu1 %v922_v4  ;;  %v342_v58 = vld [vmem:[%s1283_s3 + $0x10] sm:$0xff]  ;;  %v682_v59 = vld [vmem:[%s1283_s3 + $0xa8] sm:$0xff]  ;;  %v681_v61 = vld [vmem:[%s1283_s3 + $0xa0] sm:$0xff] }
  0x1f   : > { %732 = vmatpush3.msra.mxu0 %v231_v25  ;;  %814 = vmatpush3.msra.mxu1 %v685_v53  ;;  %v341_v60 = vld [vmem:[%s1283_s3 + $0x8] sm:$0xff]  ;;  %v340_v62 = vld [vmem:[%s1283_s3] sm:$0xff]  ;;  %v680_v63 = vld [vmem:[%s1283_s3 + $0x98] sm:$0xff] }
  0x20   : > { %733 = vmatprep.subr.mxu0 %v246_v27  ;;  %815 = vmatprep.subr.mxu1 %v922_v4  ;;  %v679_v0 = vld [vmem:[%s1283_s3 + $0x90] sm:$0xff]  ;;  %v678_v1 = vld [vmem:[%s1283_s3 + $0x88] sm:$0xff]  ;;  %v677_v2 = vld [vmem:[%s1283_s3 + $0x80] sm:$0xff] }
  0x21   : > { %734 = vmatpush3.msra.mxu0 %v230_v28  ;;  %816 = vmatpush3.msra.mxu1 %v684_v55  ;;  %v676_v5 = vld [vmem:[%s1282_s2] ss:$0 sm:$0xff]  ;;  %v708_v11 = vld [vmem:[%s1283_s3 + $0x178] sm:$0xff]  ;;  %v707_v13 = vld [vmem:[%s1283_s3 + $0x170] sm:$0xff] }
  0x22   : > { %735 = vmatprep.subr.mxu0 %v245_v30  ;;  %817 = vmatprep.subr.mxu1 %v922_v4  ;;  %v706_v14 = vld [vmem:[%s1283_s3 + $0x168] sm:$0xff]  ;;  %v705_v15 = vld [vmem:[%s1283_s3 + $0x160] sm:$0xff]  ;;  %v704_v16 = vld [vmem:[%s1283_s3 + $0x158] sm:$0xff] }
  0x23   : > { %736 = vmatpush3.msra.mxu0 %v229_v31  ;;  %818 = vmatpush3.msra.mxu1 %v683_v57  ;;  %v703_v17 = vld [vmem:[%s1283_s3 + $0x150] sm:$0xff]  ;;  %v702_v18 = vld [vmem:[%s1283_s3 + $0x148] sm:$0xff]  ;;  %v701_v19 = vld [vmem:[%s1283_s3 + $0x140] sm:$0xff] }
  0x24   : > { %737 = vmatprep.subr.mxu0 %v244_v33  ;;  %819 = vmatprep.subr.mxu1 %v922_v4  ;;  %v700_v20 = vld [vmem:[%s1283_s3 + $0x138] sm:$0xff]  ;;  %v699_v21 = vld [vmem:[%s1283_s3 + $0x130] sm:$0xff]  ;;  %v698_v22 = vld [vmem:[%s1283_s3 + $0x128] sm:$0xff] }
  0x25   : > { %738 = vmatpush3.msra.mxu0 %v228_v34  ;;  %820 = vmatpush3.msra.mxu1 %v682_v59  ;;  %v697_v23 = vld [vmem:[%s1283_s3 + $0x120] sm:$0xff]  ;;  %v696_v24 = vld [vmem:[%s1283_s3 + $0x118] sm:$0xff]  ;;  %v695_v25 = vld [vmem:[%s1283_s3 + $0x110] sm:$0xff] }
  0x26   : > { %739 = vmatprep.subr.mxu0 %v243_v35  ;;  %821 = vmatprep.subr.mxu1 %v922_v4  ;;  %v694_v26 = vld [vmem:[%s1283_s3 + $0x108] sm:$0xff]  ;;  %v693_v27 = vld [vmem:[%s1283_s3 + $0x100] sm:$0xff] }
  0x27   : > { %740 = vmatpush3.msra.mxu0 %v227_v36  ;;  %822 = vmatpush3.msra.mxu1 %v681_v61  ;;  %v709_v35 = vld [vmem:[%s1284_s4] ss:$0 sm:$0xff] }
  0x28   : > { %741 = vmatprep.subr.mxu0 %v242_v37  ;;  %823 = vmatprep.subr.mxu1 %v922_v4 }
  0x29   : > { %742 = vmatpush3.msra.mxu0 %v226_v38  ;;  %824 = vmatpush3.msra.mxu1 %v680_v63 }
  0x2a   : > { %743 = vmatprep.subr.mxu0 %v241_v39  ;;  %825 = vmatprep.subr.mxu1 %v922_v4 }
  0x2b   : > { %744 = vmatpush3.msra.mxu0 %v225_v40  ;;  %826 = vmatpush3.msra.mxu1 %v679_v0 }
  0x2c   : > { %329 = vmatmul.mubr.f32.vlgmr.msra.gmra.mxu0 %v223_v41  ;;  %834 = vmatprep.subr.mxu0 %v922_v4 }
  0x2d   : > { %835 = vmatpush3.msra.mxu0 %v355_v42  ;;  %866 = vmatprep.mubr.msk.f32.mxu0 %vm923_vm0, %v922_v4 }
  0x2e   : > { %836 = vmatprep.subr.mxu0 %v922_v4  ;;  %827 = vmatprep.subr.mxu1 %v922_v4 }
  0x2f   : > { %837 = vmatpush3.msra.mxu0 %v354_v43  ;;  %828 = vmatpush3.msra.mxu1 %v678_v1 }
  0x30   : > { %838 = vmatprep.subr.mxu0 %v922_v4  ;;  %829 = vmatprep.subr.mxu1 %v922_v4 }
  0x31   : > { %839 = vmatpush3.msra.mxu0 %v353_v44  ;;  %830 = vmatpush3.msra.mxu1 %v677_v2 }
  0x32   : > { %840 = vmatprep.subr.mxu0 %v922_v4  ;;  %869 = vmatprep.subr.mxu1 %v922_v4 }
  0x33   : > { %841 = vmatpush3.msra.mxu0 %v352_v45 }
  0x34   : > { %842 = vmatprep.subr.mxu0 %v922_v4 }
  0x35   : > { %843 = vmatpush3.msra.mxu0 %v351_v46 }
  0x36   : > { %844 = vmatprep.subr.mxu0 %v922_v4 }
  0x37   : > { %845 = vmatpush3.msra.mxu0 %v350_v47 }
  0x38   : > { %846 = vmatprep.subr.mxu0 %v922_v4 }
  0x39   : > { %847 = vmatpush3.msra.mxu0 %v349_v48 }
  0x3a   : > { %848 = vmatprep.subr.mxu0 %v922_v4 }
  0x3b   : > { %849 = vmatpush3.msra.mxu0 %v348_v49 }
  0x3c   : > { %850 = vmatprep.subr.mxu0 %v922_v4 }
  0x3d   : > { %851 = vmatpush3.msra.mxu0 %v347_v50 }
  0x3e   : > { %852 = vmatprep.subr.mxu0 %v922_v4 }
  0x3f   : > { %853 = vmatpush3.msra.mxu0 %v346_v51 }
  0x40   : > { %854 = vmatprep.subr.mxu0 %v922_v4 }
  0x41   : > { %855 = vmatpush3.msra.mxu0 %v345_v52 }
  0x42   : > { %856 = vmatprep.subr.mxu0 %v922_v4 }
  0x43   : > { %857 = vmatpush3.msra.mxu0 %v344_v54 }
  0x44   : > { %858 = vmatprep.subr.mxu0 %v922_v4 }
  0x45   : > { %859 = vmatpush3.msra.mxu0 %v343_v56 }
  0x46   : > { %860 = vmatprep.subr.mxu0 %v922_v4 }
  0x47   : > { %861 = vmatpush3.msra.mxu0 %v342_v58 }
  0x48   : > { %862 = vmatprep.subr.mxu0 %v922_v4 }
  0x49   : > { %863 = vmatpush3.msra.mxu0 %v341_v60 }
  0x4a   : > { %864 = vmatprep.subr.mxu0 %v922_v4 }
  0x4b   : > { %865 = vmatpush3.msra.mxu0 %v340_v62 }
  0xec   : > { %v745_v3 = vpop.f32.mrf.mxu0 }
  0xee   : > { %v746_v6 = vpop.f32.mrf.mxu0 }
  0xef   : > { %v747_v7 = vadd.f32 %v746_v6, %v745_v3 }
  0xf1   : > { %v331_v8 = vadd.f32 %v747_v7, %v676_v5 }
  0xf3   : > { %vm334_vm1 = vcmp.gt.f32.partialorder %v331_v8, 0.0  ;;  %v335_v9 = vmul.f32 0.2, %v331_v8 }
  0xf5   : > { %v336_v10 = vsel %vm334_vm1, %v331_v8, %v335_v9 }
  0xf6   : > { %337 = vst [vmem:[#allocation2] sm:$0xff] %v336_v10  ;;  %867 = vmatmul.mubr.f32.vlgmr.msra.gmra.mxu0 %v336_v10 }
  0xfd   : > { %v356_v12 = vld [vmem:[#allocation2 + $0x1] sm:$0xff] }
  0xfe   : > { %832 = vmatmul.mubr.f32.vlgmr.msra.gmra.mxu1 %v356_v12  ;;  %v514_v28 = vld [vmem:[#allocation2 + $0x2] sm:$0xff] }
  0xff   : > { %870 = vmatpush3.msra.mxu1 %v708_v11  ;;  %901 = vmatprep.mubr.msk.f32.mxu1 %vm923_vm0, %v922_v4 }
 0x100   : > { %871 = vmatprep.subr.mxu1 %v922_v4 }
 0x101   : > { %872 = vmatpush3.msra.mxu1 %v707_v13 }
 0x102   : > { %873 = vmatprep.subr.mxu1 %v922_v4 }
 0x103   : > { %874 = vmatpush3.msra.mxu1 %v706_v14 }
 0x104   : > { %875 = vmatprep.subr.mxu1 %v922_v4 }
 0x105   : > { %876 = vmatpush3.msra.mxu1 %v705_v15 }
 0x106   : > { %877 = vmatprep.subr.mxu1 %v922_v4 }
 0x107   : > { %878 = vmatpush3.msra.mxu1 %v704_v16 }
 0x108   : > { %879 = vmatprep.subr.mxu1 %v922_v4 }
 0x109   : > { %880 = vmatpush3.msra.mxu1 %v703_v17 }
 0x10a   : > { %881 = vmatprep.subr.mxu1 %v922_v4 }
 0x10b   : > { %882 = vmatpush3.msra.mxu1 %v702_v18 }
 0x10c   : > { %883 = vmatprep.subr.mxu1 %v922_v4 }
 0x10d   : > { %884 = vmatpush3.msra.mxu1 %v701_v19 }
 0x10e   : > { %885 = vmatprep.subr.mxu1 %v922_v4 }
 0x10f   : > { %886 = vmatpush3.msra.mxu1 %v700_v20 }
 0x110   : > { %887 = vmatprep.subr.mxu1 %v922_v4 }
 0x111   : > { %888 = vmatpush3.msra.mxu1 %v699_v21 }
 0x112   : > { %889 = vmatprep.subr.mxu1 %v922_v4 }
 0x113   : > { %890 = vmatpush3.msra.mxu1 %v698_v22 }
 0x114   : > { %891 = vmatprep.subr.mxu1 %v922_v4 }
 0x115   : > { %892 = vmatpush3.msra.mxu1 %v697_v23 }
 0x116   : > { %893 = vmatprep.subr.mxu1 %v922_v4 }
 0x117   : > { %894 = vmatpush3.msra.mxu1 %v696_v24 }
 0x118   : > { %895 = vmatprep.subr.mxu1 %v922_v4 }
 0x119   : > { %896 = vmatpush3.msra.mxu1 %v695_v25 }
 0x11a   : > { %897 = vmatprep.subr.mxu1 %v922_v4 }
 0x11b   : > { %898 = vmatpush3.msra.mxu1 %v694_v26 }
 0x11c   : > { %899 = vmatprep.subr.mxu1 %v922_v4 }
 0x11d   : > { %900 = vmatpush3.msra.mxu1 %v693_v27 }
 0x11e   : > { %902 = vmatmul.mubr.f32.vlgmr.msra.gmra.mxu1 %v514_v28 }
 0x1b6   : > { %v510_v29 = vpop.f32.mrf.mxu0 }
 0x1b8   : > { %v868_v30 = vpop.f32.mrf.mxu0 }
 0x1be   : > { %v440_v31 = vpop.f32.mrf.mxu1 }
 0x1bf   : > { %v511_v33 = vadd.f32 %v510_v29, %v440_v31 }
 0x1c0   : > { %v833_v32 = vpop.f32.mrf.mxu1 }
 0x1de   : > { %v598_v34 = vpop.f32.mrf.mxu1 }
 0x1df   : > { %v602_v36 = vadd.f32 %v598_v34, %v511_v33 }
 0x1e0   : > { %v903_v37 = vpop.f32.mrf.mxu1 }
 0x1e1   : > { %v610_v38 = vadd.f32 %v709_v35, %v602_v36 }
 0x1e3   : > { %vm611_vm2 = vcmp.gt.f32.partialorder %v610_v38, 0.0  ;;  %v612_v4 = vmul.f32 0.1, %v610_v38 }
 0x1e5   : > { %v613_v39 = vsel %vm611_vm2, %v610_v38, %v612_v4 }
 0x1e6   : > { %614 = vst [vmem:[%s222_s7] sm:$0xff] %v613_v39 }
 0x1e7 PF: > { %s15_s18 = sadd.s32 1, %s920_s18  }
 0x1e8   : > { %p12_p4 = scmp.ge.s32.totalorder %s15_s18, 4  }
 0x1ea   :  { %14 = sbr.rel (!%p12_p4) target bundleno = 1 (0x1), region = 72 }

</bundles_post_ra>
